<compile_context>
chip_gen: v5e
topology: v5e:2x2
jax: 0.10.0
libtpu: 0.0.40
codegen_flags: <defaults>
</compile_context>

<pallas_src>
import jax
import jax.numpy as jnp
from jax import lax
from jax.experimental import pallas as pl
from jax.experimental.pallas import tpu as pltpu


def time2vec_kernel(tau_ref, w_ref, bias_ref, out_ref):
    """out2d[r, b*E + e] = tau[r, b] * w[r, e] + bias[e]

    tau_ref : (rows, B)   f32   (rows = T tile)
    w_ref   : (rows, E)   f32   (omega with psi pre-folded for e >= 1)
    bias_ref: (1,    E)   f32   (psi[0] at e == 0, else 0)
    out_ref : (rows, B*E) f32   lane-dense slab
    """
    tau = tau_ref[...]            # (rows, B)
    w = w_ref[...]                # (rows, E)
    bias = bias_ref[...]          # (1, E) -- broadcasts over sublanes
    B = tau.shape[-1]

    # Per-batch rank-1 product: lane-broadcast of a (rows, 1) column against the
    # lane-resident (rows, E) weight block, plus bias.  Pure VPU FMA per piece.
    pieces = [tau[:, b:b + 1] * w + bias for b in range(B)]
    # Lane-dim concatenation -> (rows, B*E); for the default B*E = 128 this is a
    # single unmasked 8x128 vreg store per 8 rows.
    out_ref[...] = jnp.concatenate(pieces, axis=-1).astype(out_ref.dtype)


def _pick_t_tile(T, lane_width, elem_bytes=4, block_budget_bytes=1 << 20):
    """Largest divisor of T whose (t_tile, lane_width) f32 block stays under budget.

    Prefers multiples of 8 (sublane-aligned) when T itself does not fit.  The ~1 MiB
    budget keeps double-buffered in/out blocks comfortably inside the default scoped
    VMEM on all generations (incl. v7x's smaller 64 MiB physical VMEM).
    """
    max_rows = max(1, block_budget_bytes // max(1, lane_width * elem_bytes))
    fitting = [d for d in range(1, T + 1) if T % d == 0 and d <= max_rows]
    if not fitting:
        return 1
    aligned = [d for d in fitting if d == T or d % 8 == 0]
    return max(aligned) if aligned else max(fitting)


def time2vec(tau, omega, psi):
    """tau: (T, B, 1); omega: (T, 1, E); psi: (E,)  ->  (T, B, E)"""
    T, B, one = tau.shape
    assert one == 1, "tau must have a trailing singleton time dimension"
    E = omega.shape[-1]
    BE = B * E
    f32 = jnp.float32

    # Layout plumbing + parameter-only precompute (hoisted out of the kernel).
    tau2 = tau[..., 0].astype(f32)                              # (T, B)
    omega2 = omega[:, 0, :].astype(f32)                         # (T, E)
    psi32 = psi.astype(f32)
    e_idx = jnp.arange(E)
    w = omega2 + jnp.where(e_idx > 0, psi32, 0.0)               # (T, E)
    bias = jnp.where(e_idx == 0, psi32, 0.0)[None, :]           # (1, E)

    t_tile = _pick_t_tile(T, BE)
    grid = (T // t_tile,)

    out2d = pl.pallas_call(
        time2vec_kernel,
        out_shape=jax.ShapeDtypeStruct((T, BE), f32),
        grid=grid,
        in_specs=[
            pl.BlockSpec((t_tile, B), lambda i: (i, 0)),        # tau tile (rows, B)
            pl.BlockSpec((t_tile, E), lambda i: (i, 0)),        # w tile   (rows, E)
            pl.BlockSpec((1, E), lambda i: (0, 0)),             # bias     (1, E), not re-fetched
        ],
        out_specs=pl.BlockSpec((t_tile, BE), lambda i: (i, 0)), # lane-dense output slab
        compiler_params=pltpu.CompilerParams(
            # No reduction axis; T tiles are independent -> shard across TCs on v7x.
            dimension_semantics=("parallel",),
        ),
    )(tau2, w, bias)

    # Row-major (T, B*E) == (T, B, E): reshape is free metadata, no data movement.
    return out2d.reshape(T, B, E).astype(tau.dtype)


def time2vec_reference(tau, omega, psi):
    """Pure-JAX reference matching the PyTorch forward literally (f32-exact matmuls)."""
    hi = lax.Precision.HIGHEST
    v1 = jnp.matmul(tau, omega[:, :, 0:1], precision=hi) + psi[0:1]
    v2 = jnp.matmul(tau, omega[:, :, 1:] + psi[1:], precision=hi)
    return jnp.concatenate([v1, v2], axis=2)


if __name__ == "__main__":
    # Small shapes consistent with the module: input_timesteps=8, batch=4, encoding_size=32.
    T, B, E = 8, 4, 32

    key = jax.random.PRNGKey(0)
    k_tau, k_omega, k_psi = jax.random.split(key, 3)

    # Deterministic "parameters" (module __init__ uses randn of these shapes).
    omega = jax.random.normal(k_omega, (T, 1, E), dtype=jnp.float32)
    psi = jax.random.normal(k_psi, (E,), dtype=jnp.float32)
    tau = jax.random.normal(k_tau, (T, B, 1), dtype=jnp.float32)

    out = jax.block_until_ready(jax.jit(time2vec)(tau, omega, psi))

    ref = time2vec_reference(tau, omega, psi)
    assert out.shape == (T, B, E), out.shape
    assert jnp.allclose(out, ref, atol=1e-5, rtol=1e-5), "mismatch vs reference"

    print("KERNEL_OK")
</pallas_src>

<mosaic_0001>
module attributes {stable_mosaic.version = 11 : i64} {
  func.func @time2vec_kernel(%arg0: i32, %arg1: memref<8x4xf32, #tpu.memory_space<vmem>>, %arg2: memref<8x32xf32, #tpu.memory_space<vmem>>, %arg3: memref<1x32xf32, #tpu.memory_space<vmem>>, %arg4: memref<8x128xf32, #tpu.memory_space<vmem>>) attributes {dimension_semantics = [#tpu.dimension_semantics<parallel>], iteration_bounds = array<i64: 1>, scalar_prefetch = 0 : i64, scratch_operands = 0 : i64, tpu.core_type = #tpu.core_type<tc>, window_params = [{transform_indices = @transform_0, window_bounds = array<i64: 8, 4>}, {transform_indices = @transform_1, window_bounds = array<i64: 8, 32>}, {pipeline_mode = #tpu.pipeline_mode<synchronous>, transform_indices = @transform_2, window_bounds = array<i64: 1, 32>}, {transform_indices = @transform_3, window_bounds = array<i64: 8, 128>}]} {
    %c0 = arith.constant 0 : index
    %c0_0 = arith.constant 0 : index
    %0 = vector.load %arg1[%c0, %c0_0] : memref<8x4xf32, #tpu.memory_space<vmem>>, vector<8x4xf32>
    %c0_1 = arith.constant 0 : index
    %c0_2 = arith.constant 0 : index
    %1 = vector.load %arg2[%c0_1, %c0_2] : memref<8x32xf32, #tpu.memory_space<vmem>>, vector<8x32xf32>
    %c0_3 = arith.constant 0 : index
    %c0_4 = arith.constant 0 : index
    %2 = vector.load %arg3[%c0_3, %c0_4] : memref<1x32xf32, #tpu.memory_space<vmem>>, vector<1x32xf32>
    %3 = vector.extract_strided_slice %0 {offsets = [0, 0], sizes = [8, 1], strides = [1, 1]} : vector<8x4xf32> to vector<8x1xf32>
    %4 = vector.broadcast %3 : vector<8x1xf32> to vector<8x32xf32>
    %5 = arith.mulf %4, %1 : vector<8x32xf32>
    %6 = vector.broadcast %2 : vector<1x32xf32> to vector<8x32xf32>
    %7 = arith.addf %5, %6 : vector<8x32xf32>
    %8 = vector.extract_strided_slice %0 {offsets = [0, 1], sizes = [8, 1], strides = [1, 1]} : vector<8x4xf32> to vector<8x1xf32>
    %9 = vector.broadcast %8 : vector<8x1xf32> to vector<8x32xf32>
    %10 = arith.mulf %9, %1 : vector<8x32xf32>
    %11 = vector.broadcast %2 : vector<1x32xf32> to vector<8x32xf32>
    %12 = arith.addf %10, %11 : vector<8x32xf32>
    %13 = vector.extract_strided_slice %0 {offsets = [0, 2], sizes = [8, 1], strides = [1, 1]} : vector<8x4xf32> to vector<8x1xf32>
    %14 = vector.broadcast %13 : vector<8x1xf32> to vector<8x32xf32>
    %15 = arith.mulf %14, %1 : vector<8x32xf32>
    %16 = vector.broadcast %2 : vector<1x32xf32> to vector<8x32xf32>
    %17 = arith.addf %15, %16 : vector<8x32xf32>
    %18 = vector.extract_strided_slice %0 {offsets = [0, 3], sizes = [8, 1], strides = [1, 1]} : vector<8x4xf32> to vector<8x1xf32>
    %19 = vector.broadcast %18 : vector<8x1xf32> to vector<8x32xf32>
    %20 = arith.mulf %19, %1 : vector<8x32xf32>
    %21 = vector.broadcast %2 : vector<1x32xf32> to vector<8x32xf32>
    %22 = arith.addf %20, %21 : vector<8x32xf32>
    %23 = tpu.concatenate %7, %12, %17, %22 in 1 : vector<8x32xf32>, vector<8x32xf32>, vector<8x32xf32>, vector<8x32xf32> -> vector<8x128xf32>
    %c0_5 = arith.constant 0 : index
    %c0_6 = arith.constant 0 : index
    %24 = vector.load %arg4[%c0_5, %c0_6] : memref<8x128xf32, #tpu.memory_space<vmem>>, vector<8x128xf32>
    tpu.vector_store %arg4[%c0_5, %c0_6], %23 {strides = array<i32>} : memref<8x128xf32, #tpu.memory_space<vmem>>, vector<8x128xf32>,
    return
  }
  func.func @transform_0(%arg0: i32) -> (i32, i32) {
    %c0_i32 = arith.constant 0 : i32
    %c0_i32_0 = arith.constant 0 : i32
    return %arg0, %c0_i32 : i32, i32
  }
  func.func @transform_1(%arg0: i32) -> (i32, i32) {
    %c0_i32 = arith.constant 0 : i32
    %c0_i32_0 = arith.constant 0 : i32
    return %arg0, %c0_i32 : i32, i32
  }
  func.func @transform_2(%arg0: i32) -> (i32, i32) {
    %c0_i32 = arith.constant 0 : i32
    %c0_i32_0 = arith.constant 0 : i32
    %c0_i32_1 = arith.constant 0 : i32
    return %c0_i32, %c0_i32_0 : i32, i32
  }
  func.func @transform_3(%arg0: i32) -> (i32, i32) {
    %c0_i32 = arith.constant 0 : i32
    %c0_i32_0 = arith.constant 0 : i32
    return %arg0, %c0_i32 : i32, i32
  }
}

</mosaic_0001>

<bundles_post_ra>
// kernel: time2vec.1
= control target key start
LH: loop header
LB: loop body
LE: loop exit
PB: predicated region body
PF: predicated region fallthrough
CT: control target
= control target key end

     0   :  { %v81_v0 = vmov 3   ;;  %v82_v2 = vmov 1   ;;  %v83_v3 = vmov 2   ;;  %v84_v4 = vmov 0   ;;  %s86_s18 = smov 32   ;;  %s87_s19 = smov 64   ;;  %s120_s0 = inlined_call_operand.vmem [shape: f32[8,4], index: 0, kind: input, shape index: {}]   ;;  %s121_s2 = inlined_call_operand.vmem [shape: f32[1,32], index: 2, kind: input, shape index: {}]   ;;  %s122_s1 = inlined_call_operand.vmem [shape: f32[8,32], index: 1, kind: input, shape index: {}]   ;;  %s123_s3 = inlined_call_operand.vmem [shape: f32[8,128], index: 3, kind: output, shape index: {}]  }
   0x1   :  { %77 = vset.pattern.permute.xlu1 %v81_v0  ;;  %v14_v1 = vld [vmem:[%s120_s0] sm:$0xff]  ;;  %75 = vset.pattern.permute.xlu0 %v82_v2  ;;  %s85_s0 = smov 96   ;;  %vm57_vm0 = vcmask 261120   ;;  %vm59_vm1 = vcmask 523264   ;;  %vm61_vm2 = vcmask 785408  }
   0x2   :  { %40 = vperm.xlu1 %77, %v14_v1   ;;  %28 = vperm.xlu0 %75, %v14_v1   ;;  %v15_v5 = vld [vmem:[%s122_s1] sm:$0xff] }
   0x3   :  { %v80_v6 = vld [vmem:[%s121_s2] ss:$0 sm:$0xff] }
   0xa   :  { %76 = vset.pattern.permute.xlu0 %v83_v3  ;;  %78 = vset.pattern.permute.xlu1 %v84_v4 }
   0xb   :  { %34 = vperm.xlu0 %76, %v14_v1   ;;  %19 = vperm.xlu1 %78, %v14_v1  }
  0x13   :  { %79 = vset.pattern.permute.xlu0 %v81_v0 }
  0x74   :  { %v41_v7 = vpop.permute.xlu1 %40  ;;  %v29_v8 = vpop.permute.xlu0 %28 }
  0x75   :  { %v43_v9 = vmul.f32 %v41_v7, %v15_v5  ;;  %v31_v10 = vmul.f32 %v29_v8, %v15_v5 }
  0x77   :  { %v44_v11 = vadd.f32 %v80_v6, %v43_v9  ;;  %v32_v12 = vadd.f32 %v80_v6, %v31_v10 }
  0x79   :  { %54 = vrot.lane.b32.xlu1 %v44_v11, %s85_s0  ;;  %46 = vrot.lane.b32.xlu2 %v32_v12, %s86_s18 }
  0x7d   :  { %v35_v13 = vpop.permute.xlu0 %34  ;;  %v20_v16 = vpop.permute.xlu1 %19 }
  0x7e   :  { %v37_v14 = vmul.f32 %v35_v13, %v15_v5  ;;  %v22_v17 = vmul.f32 %v20_v16, %v15_v5 }
  0x80   :  { %v38_v15 = vadd.f32 %v80_v6, %v37_v14  ;;  %v26_v18 = vadd.f32 %v80_v6, %v22_v17 }
  0x82   :  { %50 = vrot.lane.b32.xlu2 %v38_v15, %s87_s19 }
  0xd3   :  { %v47_v19 = vpop.permute.xlu2 %46 }
  0xd4   :  { %v58_v20 = vsel %vm57_vm0, %v26_v18, %v47_v19 }
  0xdc   :  { %v51_v21 = vpop.permute.xlu2 %50 }
  0xdd   :  { %v60_v22 = vsel %vm59_vm1, %v58_v20, %v51_v21 }
  0xeb   :  { %v55_v23 = vpop.permute.xlu1 %54 }
  0xec   :  { %v62_v24 = vsel %vm61_vm2, %v60_v22, %v55_v23 }
  0xed   :  { %63 = vst [vmem:[%s123_s3] sm:$0xff] %v62_v24 }

</bundles_post_ra>
